<compile_context>
chip_gen: v7x
topology: tpu7x:2x2x1
jax: 0.10.0
libtpu: 0.0.40
codegen_flags: <defaults>
</compile_context>

<pallas_src>
import math

import jax
import jax.numpy as jnp
from jax import lax
from jax.experimental import pallas as pl
from jax.experimental.pallas import tpu as pltpu


# ----------------------------------------------------------------------------
# Activation math (constants folded at trace time; operates on f32 tiles).
# ----------------------------------------------------------------------------
def _gate_term(x, a, b, c, d, scale, clamp, neg):
    # a * (x*scale - b) / (1 + exp(c - x*scale/d)), with scale/d, a*scale, a*b
    # folded into Python-float constants (no in-kernel divide by d).
    z = c - x * (scale / d)
    if clamp:
        z = jnp.clip(z, -60.0, 60.0)
    num = (a * scale) * x - (a * b)
    if neg:
        num = -num
    return num / (1.0 + jnp.exp(z))


def _k_term(x, a, b, c, d, scale, clamp, neg):
    # a / (d + exp(-b*(x*scale - c)))
    z = (-b * scale) * x + (b * c)
    if clamp:
        z = jnp.clip(z, -60.0, 60.0)
    r = a / (d + jnp.exp(z))
    return -r if neg else r


def _apply_activation(h, activation, p):
    if activation == "relu":            # LeakyReLU(negative_slope=leak)
        return jnp.where(h >= 0.0, h, p["leak"] * h)
    if activation == "linear":
        return h
    s = p["scale"]
    if activation == "nck":
        i_na = _gate_term(h, 0.0878, 113.68, 6.39, 8.98, s, clamp=False, neg=False)
        i_ca = _gate_term(h, 0.129, 69.62, -4.4, 4.25, s, clamp=False, neg=False)
        i_k = _k_term(h, 2.23, 0.132, 16.74, 0.436, s, clamp=False, neg=False)
        return p["alpha"] * i_na + p["beta"] * i_ca + p["gamma"] * i_k
    if activation == "sqgl":
        # SQGL.forward takes abs() of the learnable gains before use.
        a_, b_, g_ = abs(p["alpha"]), abs(p["beta"]), abs(p["gamma"])
        i_na = _gate_term(h, 0.0878, 113.68, 6.39, 8.98, s, clamp=True, neg=True)
        i_ca = _gate_term(h, 0.129, 69.62, -4.4, 4.25, s, clamp=True, neg=True)
        i_k = _k_term(h, 2.23, 0.132, 16.74, 0.436, s, clamp=True, neg=True)
        i_ion = a_ * i_na + b_ * i_ca + g_ * i_k
        return (h * p["linscale"] + i_ion) * p["atten"]
    raise ValueError(f"unknown activation: {activation}")


# ----------------------------------------------------------------------------
# Kernel 1: fused  h = act(x @ W1^T + b1)
# ----------------------------------------------------------------------------
def _make_linear_act_kernel(activation, params):
    def kernel(x_ref, w_ref, b_ref, o_ref, acc_ref):
        k = pl.program_id(2)

        @pl.when(k == 0)
        def _init():
            acc_ref[...] = jnp.zeros_like(acc_ref)

        # x:(tb,tk)  w:(tn,tk) (PyTorch (out,in) layout) -> contract on K.
        acc_ref[...] += lax.dot_general(
            x_ref[...], w_ref[...],
            dimension_numbers=(((1,), (1,)), ((), ())),
            preferred_element_type=jnp.float32)

        @pl.when(k == pl.num_programs(2) - 1)
        def _finish():
            h = acc_ref[...] + b_ref[...].astype(jnp.float32)
            h = _apply_activation(h, activation, params)
            o_ref[...] = h.astype(o_ref.dtype)   # dtype cast fused in-kernel

    return kernel


def _linear_activation(x, w1, b1, activation, params, tb, tn, tk):
    B, K = x.shape
    N = w1.shape[0]
    b2d = b1.reshape(1, N)
    grid = (B // tb, N // tn, K // tk)
    return pl.pallas_call(
        _make_linear_act_kernel(activation, params),
        out_shape=jax.ShapeDtypeStruct((B, N), x.dtype),
        grid_spec=pltpu.PrefetchScalarGridSpec(
            num_scalar_prefetch=0,
            grid=grid,
            in_specs=[
                pl.BlockSpec((tb, tk), lambda i, j, k: (i, k)),
                pl.BlockSpec((tn, tk), lambda i, j, k: (j, k)),
                pl.BlockSpec((1, tn), lambda i, j, k: (0, j)),
            ],
            out_specs=pl.BlockSpec((tb, tn), lambda i, j, k: (i, j)),
            scratch_shapes=[pltpu.VMEM((tb, tn), jnp.float32)],
        ),
        compiler_params=pltpu.CompilerParams(
            dimension_semantics=("parallel", "parallel", "arbitrary")),
    )(x, w1, b2d)


# ----------------------------------------------------------------------------
# Kernel 2:  out = h @ W2^T + b2   (Output_size is tiny, e.g. 1)
# ----------------------------------------------------------------------------
def _out_linear_kernel(h_ref, w_ref, b_ref, o_ref):
    acc = lax.dot_general(
        h_ref[...], w_ref[...],
        dimension_numbers=(((1,), (1,)), ((), ())),
        preferred_element_type=jnp.float32)
    o_ref[...] = (acc + b_ref[...].astype(jnp.float32)).astype(o_ref.dtype)


def _output_linear(h, w2, b2, tb):
    B, H = h.shape
    O = w2.shape[0]
    b2d = b2.reshape(1, O)
    return pl.pallas_call(
        _out_linear_kernel,
        out_shape=jax.ShapeDtypeStruct((B, O), h.dtype),
        grid_spec=pltpu.PrefetchScalarGridSpec(
            num_scalar_prefetch=0,
            grid=(B // tb,),
            in_specs=[
                pl.BlockSpec((tb, H), lambda i: (i, 0)),
                pl.BlockSpec((O, H), lambda i: (0, 0)),
                pl.BlockSpec((1, O), lambda i: (0, 0)),
            ],
            out_specs=pl.BlockSpec((tb, O), lambda i: (i, 0)),
        ),
        compiler_params=pltpu.CompilerParams(
            dimension_semantics=("parallel",)),
    )(h, w2, b2d)


# ----------------------------------------------------------------------------
# Wrapper: simple_fcnn.forward
# ----------------------------------------------------------------------------
def _pick_tile(dim, candidates):
    for c in candidates:
        if dim % c == 0:
            return c
    return dim  # full-extent block is always legal


def simple_fcnn_forward(x, w1, b1, w2, b2, *, activation="relu",
                        alpha=1.0, beta=0.6, gamma=1.0, scale=1.0,
                        atten=1.0, linscale=1.0, leak=0.01):
    """Pallas TPU forward of simple_fcnn: h2o(act(i2h(x)))."""
    B, K = x.shape
    # Pad batch up to a multiple of 8 so the sublane dim stays aligned.
    B_pad = -(-B // 8) * 8
    if B_pad != B:
        x = jnp.pad(x, ((0, B_pad - B), (0, 0)))

    N = w1.shape[0]
    tb = _pick_tile(B_pad, (256, 128, 64, 32, 16, 8))
    tk = _pick_tile(K, (512, 256, 128))
    tn = _pick_tile(N, (512, 256, 128))   # lane-dense (multiple of 128) output blocks

    params = dict(alpha=float(alpha), beta=float(beta), gamma=float(gamma),
                  scale=float(scale), atten=float(atten),
                  linscale=float(linscale), leak=float(leak))

    h = _linear_activation(x, w1, b1, activation, params, tb, tn, tk)
    out = _output_linear(h, w2, b2, tb)
    return out[:B]


# ----------------------------------------------------------------------------
# Pure-JAX reference (mirrors the PyTorch module exactly).
# ----------------------------------------------------------------------------
def _ref_forward(x, w1, b1, w2, b2, activation, p):
    hp = jax.lax.Precision.HIGHEST
    h = jnp.dot(x, w1.T, precision=hp) + b1
    s = p["scale"]

    def f_na(v, a=0.0878, b=113.68, c=6.39, d=8.98, clamp=False, neg=False):
        vs = v * s
        z = c - vs / d
        if clamp:
            z = jnp.clip(z, -60.0, 60.0)
        r = a * (vs - b) / (1.0 + jnp.exp(z))
        return -r if neg else r

    def f_k(v, a=2.23, b=0.132, c=16.74, d=0.436, clamp=False, neg=False):
        vs = v * s
        z = -b * (vs - c)
        if clamp:
            z = jnp.clip(z, -60.0, 60.0)
        r = a / (d + jnp.exp(z))
        return -r if neg else r

    if activation == "relu":
        h = jnp.where(h >= 0.0, h, p["leak"] * h)
    elif activation == "nck":
        h = (p["alpha"] * f_na(h) + p["beta"] * f_na(h, 0.129, 69.62, -4.4, 4.25)
             + p["gamma"] * f_k(h))
    elif activation == "sqgl":
        i_ion = (abs(p["alpha"]) * f_na(h, clamp=True, neg=True)
                 + abs(p["beta"]) * f_na(h, 0.129, 69.62, -4.4, 4.25, clamp=True, neg=True)
                 + abs(p["gamma"]) * f_k(h, clamp=True, neg=True))
        h = (h * p["linscale"] + i_ion) * p["atten"]
    # 'linear' / unknown: pass through
    return jnp.dot(h, w2.T, precision=hp) + b2


if __name__ == "__main__":
    key = jax.random.PRNGKey(0)
    B, In, Hd, Out = 8, 256, 256, 1
    k1, k2, k3 = jax.random.split(key, 3)

    x = jax.random.normal(k1, (B, In), dtype=jnp.float32)
    # kaiming_normal_(a=0.01) init, zero biases (as in the module ctor)
    std1 = math.sqrt(2.0 / ((1.0 + 0.01 ** 2) * In))
    w1 = (jax.random.normal(k2, (Hd, In), dtype=jnp.float32) * std1)
    b1 = jnp.zeros((Hd,), jnp.float32)
    std2 = math.sqrt(2.0 / ((1.0 + 0.01 ** 2) * Hd))
    w2 = (jax.random.normal(k3, (Out, Hd), dtype=jnp.float32) * std2)
    b2 = jnp.zeros((Out,), jnp.float32)

    params = dict(alpha=1.0, beta=0.6, gamma=1.0, scale=1.0,
                  atten=1.0, linscale=1.0, leak=0.01)

    for act in ("relu", "sqgl"):
        out = simple_fcnn_forward(x, w1, b1, w2, b2, activation=act, **params)
        out = jax.block_until_ready(out)
        ref = _ref_forward(x, w1, b1, w2, b2, act, params)
        assert out.shape == (B, Out) and out.dtype == x.dtype
        assert jnp.allclose(out, ref, rtol=1e-3, atol=1e-3), (
            f"mismatch for activation={act}")

    print("KERNEL_OK")
</pallas_src>

<mosaic_0001>
module attributes {stable_mosaic.version = 11 : i64} {
  func.func @kernel(%arg0: i32, %arg1: i32, %arg2: i32, %arg3: memref<8x256xf32, #tpu.memory_space<vmem>>, %arg4: memref<256x256xf32, #tpu.memory_space<vmem>>, %arg5: memref<1x256xf32, #tpu.memory_space<vmem>>, %arg6: memref<8x256xf32, #tpu.memory_space<vmem>>, %arg7: memref<8x256xf32, #tpu.memory_space<vmem>>) attributes {dimension_semantics = [#tpu.dimension_semantics<parallel>, #tpu.dimension_semantics<parallel>, #tpu.dimension_semantics<arbitrary>], iteration_bounds = array<i64: 1, 1, 1>, scalar_prefetch = 0 : i64, scratch_operands = 1 : i64, tpu.core_type = #tpu.core_type<tc>, window_params = [{transform_indices = @transform_0, window_bounds = array<i64: 8, 256>}, {transform_indices = @transform_1, window_bounds = array<i64: 256, 256>}, {transform_indices = @transform_2, window_bounds = array<i64: 1, 256>}, {transform_indices = @transform_3, window_bounds = array<i64: 8, 256>}]} {
    %c0_i32 = arith.constant 0 : i32
    %0 = arith.cmpi eq, %arg2, %c0_i32 : i32
    %1 = arith.extui %0 : i1 to i32
    %c0_i32_0 = arith.constant 0 : i32
    %2 = arith.cmpi ne, %1, %c0_i32_0 : i32
    scf.if %2 {
      %cst_10 = arith.constant 0.000000e+00 : f32
      %12 = vector.broadcast %cst_10 : f32 to vector<8x256xf32>
      %c0_11 = arith.constant 0 : index
      %c0_12 = arith.constant 0 : index
      %13 = vector.load %arg7[%c0_11, %c0_12] : memref<8x256xf32, #tpu.memory_space<vmem>>, vector<8x256xf32>
      tpu.vector_store %arg7[%c0_11, %c0_12], %12 {strides = array<i32>} : memref<8x256xf32, #tpu.memory_space<vmem>>, vector<8x256xf32>,
    } else {
    }
    %c0 = arith.constant 0 : index
    %c0_1 = arith.constant 0 : index
    %3 = vector.load %arg7[%c0, %c0_1] : memref<8x256xf32, #tpu.memory_space<vmem>>, vector<8x256xf32>
    %c0_2 = arith.constant 0 : index
    %c0_3 = arith.constant 0 : index
    %4 = vector.load %arg3[%c0_2, %c0_3] : memref<8x256xf32, #tpu.memory_space<vmem>>, vector<8x256xf32>
    %c0_4 = arith.constant 0 : index
    %c0_5 = arith.constant 0 : index
    %5 = vector.load %arg4[%c0_4, %c0_5] : memref<256x256xf32, #tpu.memory_space<vmem>>, vector<256x256xf32>
    %cst = arith.constant dense<0.000000e+00> : vector<8x256xf32>
    %6 = tpu.matmul %4, %5, %cst {dimension_numbers = #tpu.dot_dimension_numbers<[1], [1], [0], [0], [0, 0, 1, 0], [], []>} : vector<8x256xf32>, vector<256x256xf32>, vector<8x256xf32> -> vector<8x256xf32>
    %7 = arith.addf %3, %6 : vector<8x256xf32>
    %c0_6 = arith.constant 0 : index
    %c0_7 = arith.constant 0 : index
    %8 = vector.load %arg7[%c0_6, %c0_7] : memref<8x256xf32, #tpu.memory_space<vmem>>, vector<8x256xf32>
    tpu.vector_store %arg7[%c0_6, %c0_7], %7 {strides = array<i32>} : memref<8x256xf32, #tpu.memory_space<vmem>>, vector<8x256xf32>,
    %c0_i32_8 = arith.constant 0 : i32
    %9 = arith.cmpi eq, %arg2, %c0_i32_8 : i32
    %10 = arith.extui %9 : i1 to i32
    %c0_i32_9 = arith.constant 0 : i32
    %11 = arith.cmpi ne, %10, %c0_i32_9 : i32
    scf.if %11 {
      %c0_10 = arith.constant 0 : index
      %c0_11 = arith.constant 0 : index
      %12 = vector.load %arg7[%c0_10, %c0_11] : memref<8x256xf32, #tpu.memory_space<vmem>>, vector<8x256xf32>
      %c0_12 = arith.constant 0 : index
      %c0_13 = arith.constant 0 : index
      %13 = vector.load %arg5[%c0_12, %c0_13] : memref<1x256xf32, #tpu.memory_space<vmem>>, vector<1x256xf32>
      %14 = vector.broadcast %13 : vector<1x256xf32> to vector<8x256xf32>
      %15 = arith.addf %12, %14 : vector<8x256xf32>
      %cst_14 = arith.constant 0.000000e+00 : f32
      %16 = vector.broadcast %cst_14 : f32 to vector<8x256xf32>
      %17 = arith.cmpf oge, %15, %16 : vector<8x256xf32>
      %cst_15 = arith.constant 0.00999999977 : f32
      %18 = vector.broadcast %cst_15 : f32 to vector<8x256xf32>
      %19 = arith.mulf %18, %15 : vector<8x256xf32>
      %20 = arith.select %17, %15, %19 : vector<8x256xi1>, vector<8x256xf32>
      %c0_16 = arith.constant 0 : index
      %c0_17 = arith.constant 0 : index
      %21 = vector.load %arg6[%c0_16, %c0_17] : memref<8x256xf32, #tpu.memory_space<vmem>>, vector<8x256xf32>
      tpu.vector_store %arg6[%c0_16, %c0_17], %20 {strides = array<i32>} : memref<8x256xf32, #tpu.memory_space<vmem>>, vector<8x256xf32>,
    } else {
    }
    return
  }
  func.func @transform_0(%arg0: i32, %arg1: i32, %arg2: i32) -> (i32, i32) {
    %c0_i32 = arith.constant 0 : i32
    return %arg0, %arg2 : i32, i32
  }
  func.func @transform_1(%arg0: i32, %arg1: i32, %arg2: i32) -> (i32, i32) {
    %c0_i32 = arith.constant 0 : i32
    return %arg1, %arg2 : i32, i32
  }
  func.func @transform_2(%arg0: i32, %arg1: i32, %arg2: i32) -> (i32, i32) {
    %c0_i32 = arith.constant 0 : i32
    %c0_i32_0 = arith.constant 0 : i32
    return %c0_i32, %arg1 : i32, i32
  }
  func.func @transform_3(%arg0: i32, %arg1: i32, %arg2: i32) -> (i32, i32) {
    %c0_i32 = arith.constant 0 : i32
    return %arg0, %arg1 : i32, i32
  }
}

</mosaic_0001>

<bundles_post_ra>
// kernel: tpu_custom_call.1
= control target key start
LH: loop header
LB: loop body
LE: loop exit
PB: predicated region body
PF: predicated region fallthrough
CT: control target
= control target key end

     0   :  { %8 = vsyncpa [#allocation4], 0  ;;  %s445_s0 = inlined_call_operand.hbm [shape: f32[8,256], index: 0, kind: input, shape index: {}]   ;;  %s446_s1 = inlined_call_operand.hbm [shape: f32[256,256], index: 1, kind: input, shape index: {}]   ;;  %s447_s2 = inlined_call_operand.vmem [shape: f32[1,256], index: 2, kind: input, shape index: {}]   ;;  %s448_s3 = inlined_call_operand.hbm [shape: f32[8,256], index: 3, kind: output, shape index: {}]  }
   0x1   :  { %9 = vsyncpa [#allocation7], 0 }
   0x2   :  { %10 = vsyncpa [#allocation5], 0  ;;  %s374_s12 = smov [#allocation3]   ;;  %s375_s14 = smov [#allocation6]  }
   0x3   :  { %s17_s13 = sshll.u32 %s374_s12, 4  ;;  %s26_s15 = sshll.u32 %s375_s14, 4  ;;  %s18_s13 = int_to_ptr.vmem [resolvable:$true] %s17_s13  ;;  %s399_s15 = int_to_ptr.vmem [resolvable:$true] %s26_s15 }
   0x4   :  { %s302_s18 = scalar_lea.hbm %s445_s0, 256 }
   0x5   :  { %p303_p0 = scmp.ne.s32.totalorder %s445_s0, %s302_s18  ;;  %p306_p1 = scmp.lt.u32.totalorder %s302_s18, %s445_s0 }
   0x7   :  { %p308_p2 = pnand %p306_p1, %p303_p0 }
   0x9   :  { %311 = shalt.err (!%p308_p2)
}
   0xa   :  { %s312_s23 = scalar_lea.vmem %s18_s13, 256  ;;  %p317_p4 = scmp.lt.s32.totalorder %s18_s13, %s18_s13 }
   0xb   :  { %p313_p3 = scmp.ne.s32.totalorder %s18_s13, %s312_s23  ;;  %p318_p5 = scmp.lt.s32.totalorder %s312_s23, %s312_s23 }
   0xd   :  { %p319_p6 = por %p318_p5, %p317_p4 }
   0xf   :  { %p320_p7 = pnand %p319_p6, %p313_p3 }
  0x11   :  { %323 = shalt.err (!%p320_p7)
}
  0x12   :  { %20 = dma.hbm_to_vmem [thread:$0]  %s445_s0, 256, %s18_s13, [#allocation4]  }
  0x13   :  { %s324_s28 = scalar_lea.hbm %s446_s1, 8192 }
  0x14   :  { %p325_p8 = scmp.ne.s32.totalorder %s446_s1, %s324_s28  ;;  %p328_p9 = scmp.lt.u32.totalorder %s324_s28, %s446_s1 }
  0x16   :  { %p330_p10 = pnand %p328_p9, %p325_p8 }
  0x18   :  { %333 = shalt.err (!%p330_p10)
}
  0x19   :  { %s334_s6 = scalar_lea.vmem %s399_s15, 8192  ;;  %p339_p12 = scmp.lt.s32.totalorder %s399_s15, %s399_s15 }
  0x1a   :  { %p335_p11 = scmp.ne.s32.totalorder %s399_s15, %s334_s6  ;;  %p340_p13 = scmp.lt.s32.totalorder %s334_s6, %s334_s6 }
  0x1c   :  { %p341_p0 = por %p340_p13, %p339_p12 }
  0x1e   :  { %p342_p1 = pnand %p341_p0, %p335_p11 }
  0x20   :  { %345 = shalt.err (!%p342_p1)
}
  0x21   :  { %s376_s0 = smov 256   ;;  %s377_s7 = smov 16  }
  0x22   :  { %32 = dma.hbm_to_vmem [thread:$0]  %s446_s1, 8192, %s399_s15, [#allocation7], %s376_s0, %s376_s0, %s377_s7  }
  0x23   :  { %368 = dma.done.wait [#allocation4], 256  }
  0x24   :  { %369 = vsyncadd [#allocation4], 4294967040 }
  0x25   :  { %370 = dma.done.wait [#allocation7], 8192  }
  0x26   :  { %371 = vsyncadd [#allocation7], 4294959104  ;;  %v52_v0 = vld [vmem:[#allocation6 + $0x8] sm:$0xff]  ;;  %v54_v1 = vld [vmem:[#allocation6 + $0x18] sm:$0xff]  ;;  %s378_s11 = smov [#allocation8]  }
  0x27   :  { %v51_v2 = vld [vmem:[#allocation6] sm:$0xff]  ;;  %v233_v3 = vpack.c.bf16 %v54_v1, %v52_v0  ;;  %v53_v4 = vld [vmem:[#allocation6 + $0x10] sm:$0xff]  ;;  %v56_v5 = vld [vmem:[#allocation6 + $0x28] sm:$0xff]  ;;  %s223_s12 = sshll.u32 %s378_s11, 4  ;;  %s224_s12 = int_to_ptr.vmem [resolvable:$true] %s223_s12 }
  0x28   :  { %v58_v6 = vld [vmem:[#allocation6 + $0x38] sm:$0xff]  ;;  %v235_v7 = vpack.c.bf16 %v53_v4, %v51_v2  ;;  %v55_v9 = vld [vmem:[#allocation6 + $0x20] sm:$0xff]  ;;  %v57_v10 = vld [vmem:[#allocation6 + $0x30] sm:$0xff]  ;;  %s346_s13 = scalar_lea.vmem %s224_s12, 256  ;;  %p351_p3 = scmp.lt.s32.totalorder %s224_s12, %s224_s12 }
  0x29   :  { %v237_v8 = vpack.c.bf16 %v58_v6, %v56_v5  ;;  %234 = vmatprep.subr.bf16.mxu0 %v233_v3  ;;  %v60_v11 = vld [vmem:[#allocation6 + $0x48] sm:$0xff]  ;;  %v62_v12 = vld [vmem:[#allocation6 + $0x58] sm:$0xff]  ;;  %v239_v13 = vpack.c.bf16 %v57_v10, %v55_v9  ;;  %v59_v15 = vld [vmem:[#allocation6 + $0x40] sm:$0xff]  ;;  %p347_p2 = scmp.ne.s32.totalorder %s224_s12, %s346_s13  ;;  %p352_p4 = scmp.lt.s32.totalorder %s346_s13, %s346_s13 }
  0x2a   :  { %236 = vmatpush1.bf16.xpose.msra.mxu0 %v235_v7  ;;  %v241_v14 = vpack.c.bf16 %v62_v12, %v60_v11  ;;  %v61_v16 = vld [vmem:[#allocation6 + $0x50] sm:$0xff]  ;;  %v64_v17 = vld [vmem:[#allocation6 + $0x68] sm:$0xff]  ;;  %v66_v18 = vld [vmem:[#allocation6 + $0x78] sm:$0xff] }
  0x2b   :  { %238 = vmatprep.subr.bf16.mxu0 %v237_v8  ;;  %v243_v19 = vpack.c.bf16 %v61_v16, %v59_v15  ;;  %v245_v20 = vpack.c.bf16 %v66_v18, %v64_v17  ;;  %v63_v21 = vld [vmem:[#allocation6 + $0x60] sm:$0xff]  ;;  %v65_v22 = vld [vmem:[#allocation6 + $0x70] sm:$0xff]  ;;  %v50_v23 = vld [vmem:[#allocation3 + $0x8] sm:$0xff]  ;;  %p353_p5 = por %p352_p4, %p351_p3 }
  0x2c   :  { %v68_v24 = vld [vmem:[#allocation6 + $0x88] sm:$0xff]  ;;  %v70_v25 = vld [vmem:[#allocation6 + $0x98] sm:$0xff]  ;;  %179 = vmatprep.mubr.f32.mxu0 %v50_v23  ;;  %v247_v26 = vpack.c.bf16 %v65_v22, %v63_v21  ;;  %v67_v28 = vld [vmem:[#allocation6 + $0x80] sm:$0xff] }
  0x2d   :  { %v249_v27 = vpack.c.bf16 %v70_v25, %v68_v24  ;;  %v69_v29 = vld [vmem:[#allocation6 + $0x90] sm:$0xff]  ;;  %v72_v30 = vld [vmem:[#allocation6 + $0xa8] sm:$0xff]  ;;  %v74_v31 = vld [vmem:[#allocation6 + $0xb8] sm:$0xff]  ;;  %p354_p6 = pnand %p353_p5, %p347_p2 }
  0x2e   :  { %v251_v32 = vpack.c.bf16 %v69_v29, %v67_v28  ;;  %v253_v33 = vpack.c.bf16 %v74_v31, %v72_v30  ;;  %v71_v34 = vld [vmem:[#allocation6 + $0xa0] sm:$0xff]  ;;  %v73_v35 = vld [vmem:[#allocation6 + $0xb0] sm:$0xff]  ;;  %v76_v36 = vld [vmem:[#allocation6 + $0xc8] sm:$0xff] }
  0x2f   :  { %v78_v37 = vld [vmem:[#allocation6 + $0xd8] sm:$0xff]  ;;  %v255_v38 = vpack.c.bf16 %v73_v35, %v71_v34  ;;  %v75_v40 = vld [vmem:[#allocation6 + $0xc0] sm:$0xff]  ;;  %v77_v41 = vld [vmem:[#allocation6 + $0xd0] sm:$0xff]  ;;  %v197_v34 = vlaneseq }
  0x30   :  { %v257_v39 = vpack.c.bf16 %v78_v37, %v76_v36  ;;  %v80_v42 = vld [vmem:[#allocation6 + $0xe8] sm:$0xff]  ;;  %v82_v43 = vld [vmem:[#allocation6 + $0xf8] sm:$0xff]  ;;  %v259_v44 = vpack.c.bf16 %v77_v41, %v75_v40  ;;  %v79_v46 = vld [vmem:[#allocation6 + $0xe0] sm:$0xff] }
  0x31   :  { %v261_v45 = vpack.c.bf16 %v82_v43, %v80_v42  ;;  %v81_v47 = vld [vmem:[#allocation6 + $0xf0] sm:$0xff]  ;;  %v84_v48 = vld [vmem:[#allocation6 + $0x108] sm:$0xff]  ;;  %v86_v49 = vld [vmem:[#allocation6 + $0x118] sm:$0xff]  ;;  %v198_v35 = vshrl.u32 %v197_v34, 7 }
  0x32   :  { %240 = vmatpush1.bf16.xpose.msra.mxu0 %v239_v13  ;;  %v263_v50 = vpack.c.bf16 %v81_v47, %v79_v46  ;;  %v265_v51 = vpack.c.bf16 %v86_v49, %v84_v48  ;;  %v83_v52 = vld [vmem:[#allocation6 + $0x100] sm:$0xff]  ;;  %v85_v53 = vld [vmem:[#allocation6 + $0x110] sm:$0xff]  ;;  %v88_v54 = vld [vmem:[#allocation6 + $0x128] sm:$0xff] }
  0x33   :  { %242 = vmatprep.subr.bf16.mxu0 %v241_v14  ;;  %v90_v55 = vld [vmem:[#allocation6 + $0x138] sm:$0xff]  ;;  %v267_v56 = vpack.c.bf16 %v85_v53, %v83_v52  ;;  %v87_v58 = vld [vmem:[#allocation6 + $0x120] sm:$0xff]  ;;  %v89_v59 = vld [vmem:[#allocation6 + $0x130] sm:$0xff]  ;;  %v199_v36 = vsub.s32 0, %v198_v35 }
  0x34   :  { %v269_v57 = vpack.c.bf16 %v90_v55, %v88_v54  ;;  %v92_v60 = vld [vmem:[#allocation6 + $0x148] sm:$0xff]  ;;  %v94_v61 = vld [vmem:[#allocation6 + $0x158] sm:$0xff]  ;;  %v271_v62 = vpack.c.bf16 %v89_v59, %v87_v58  ;;  %v91_v0 = vld [vmem:[#allocation6 + $0x140] sm:$0xff] }
  0x35   :  { %v273_v63 = vpack.c.bf16 %v94_v61, %v92_v60  ;;  %v93_v1 = vld [vmem:[#allocation6 + $0x150] sm:$0xff]  ;;  %v96_v2 = vld [vmem:[#allocation6 + $0x168] sm:$0xff]  ;;  %v98_v3 = vld [vmem:[#allocation6 + $0x178] sm:$0xff] }
  0x36   :  { %v275_v4 = vpack.c.bf16 %v93_v1, %v91_v0  ;;  %v277_v5 = vpack.c.bf16 %v98_v3, %v96_v2  ;;  %v95_v6 = vld [vmem:[#allocation6 + $0x160] sm:$0xff]  ;;  %v97_v7 = vld [vmem:[#allocation6 + $0x170] sm:$0xff]  ;;  %v100_v8 = vld [vmem:[#allocation6 + $0x188] sm:$0xff] }
  0x37   :  { %v102_v9 = vld [vmem:[#allocation6 + $0x198] sm:$0xff]  ;;  %v279_v10 = vpack.c.bf16 %v97_v7, %v95_v6  ;;  %v99_v12 = vld [vmem:[#allocation6 + $0x180] sm:$0xff]  ;;  %v101_v13 = vld [vmem:[#allocation6 + $0x190] sm:$0xff] }
  0x38   :  { %v281_v11 = vpack.c.bf16 %v102_v9, %v100_v8  ;;  %v104_v14 = vld [vmem:[#allocation6 + $0x1a8] sm:$0xff]  ;;  %v106_v15 = vld [vmem:[#allocation6 + $0x1b8] sm:$0xff]  ;;  %v283_v16 = vpack.c.bf16 %v101_v13, %v99_v12  ;;  %v103_v18 = vld [vmem:[#allocation6 + $0x1a0] sm:$0xff] }
  0x39   :  { %v285_v17 = vpack.c.bf16 %v106_v15, %v104_v14  ;;  %v110_v21 = vld [vmem:[#allocation6 + $0x1d8] sm:$0xff]  ;;  %v107_v24 = vld [vmem:[#allocation6 + $0x1c0] sm:$0xff]  ;;  %v109_v25 = vld [vmem:[#allocation6 + $0x1d0] sm:$0xff] }
  0x3a   :  { %244 = vmatpush1.bf16.xpose.msra.mxu0 %v243_v19  ;;  %v105_v19 = vld [vmem:[#allocation6 + $0x1b0] sm:$0xff]  ;;  %v291_v28 = vpack.c.bf16 %v109_v25, %v107_v24  ;;  %v111_v30 = vld [vmem:[#allocation6 + $0x1e0] sm:$0xff] }
  0x3b   :  { %246 = vmatprep.subr.bf16.mxu0 %v245_v20  ;;  %v108_v20 = vld [vmem:[#allocation6 + $0x1c8] sm:$0xff]  ;;  %v287_v22 = vpack.c.bf16 %v105_v19, %v103_v18  ;;  %v113_v31 = vld [vmem:[#allocation6 + $0x1f0] sm:$0xff] }
  0x3c   :  { %v289_v23 = vpack.c.bf16 %v110_v21, %v108_v20  ;;  %v195_v37 = vld [vmem:[%s447_s2] sm:$0x3] }
  0x42   :  { %248 = vmatpush1.bf16.xpose.msra.mxu0 %v247_v26  ;;  %v112_v26 = vld [vmem:[#allocation6 + $0x1e8] sm:$0xff] }
  0x43   :  { %250 = vmatprep.subr.bf16.mxu0 %v249_v27  ;;  %v114_v27 = vld [vmem:[#allocation6 + $0x1f8] sm:$0xff] }
  0x44   :  { %v293_v29 = vpack.c.bf16 %v114_v27, %v112_v26 }
  0x4a   :  { %252 = vmatpush1.bf16.xpose.msra.mxu0 %v251_v32  ;;  %v295_v32 = vpack.c.bf16 %v113_v31, %v111_v30 }
  0x4b   :  { %254 = vmatprep.subr.bf16.mxu0 %v253_v33  ;;  %v49_v33 = vld [vmem:[#allocation3] sm:$0xff] }
  0x52   :  { %256 = vmatpush1.bf16.xpose.msra.mxu0 %v255_v38  ;;  %v203_v38 = vsub.s32 1, %v198_v35 }
  0x53   :  { %258 = vmatprep.subr.bf16.mxu0 %v257_v39  ;;  %v200_v39 = vrot.slane %v195_v37, %v199_v36 }
  0x54   :  { %v204_v40 = vrot.slane %v195_v37, %v203_v38 }
  0x5a   :  { %260 = vmatpush1.bf16.xpose.msra.mxu0 %v259_v44 }
  0x5b   :  { %262 = vmatprep.subr.bf16.mxu0 %v261_v45 }
  0x62   :  { %264 = vmatpush1.bf16.xpose.msra.mxu0 %v263_v50 }
  0x63   :  { %266 = vmatprep.subr.bf16.mxu0 %v265_v51 }
  0x6a   :  { %268 = vmatpush1.bf16.xpose.msra.mxu0 %v267_v56 }
  0x6b   :  { %270 = vmatprep.subr.bf16.mxu0 %v269_v57 }
  0x72   :  { %272 = vmatpush1.bf16.xpose.msra.mxu0 %v271_v62 }
  0x73   :  { %274 = vmatprep.subr.bf16.mxu0 %v273_v63 }
  0x7a   :  { %276 = vmatpush1.bf16.xpose.msra.mxu0 %v275_v4 }
  0x7b   :  { %278 = vmatprep.subr.bf16.mxu0 %v277_v5 }
  0x82   :  { %280 = vmatpush1.bf16.xpose.msra.mxu0 %v279_v10 }
  0x83   :  { %282 = vmatprep.subr.bf16.mxu0 %v281_v11 }
  0x8a   :  { %284 = vmatpush1.bf16.xpose.msra.mxu0 %v283_v16 }
  0x8b   :  { %286 = vmatprep.subr.bf16.mxu0 %v285_v17 }
  0x92   :  { %288 = vmatpush1.bf16.xpose.msra.mxu0 %v287_v22 }
  0x93   :  { %290 = vmatprep.subr.bf16.mxu0 %v289_v23 }
  0x9a   :  { %292 = vmatpush1.bf16.xpose.msra.mxu0 %v291_v28 }
  0x9b   :  { %294 = vmatprep.subr.bf16.mxu0 %v293_v29 }
  0xa2   :  { %296 = vmatpush1.bf16.xpose.msra.mxu0 %v295_v32 }
  0xa9   :  { %180 = vmatmul.mubr.f32.vlgmr.msra.gmra.mrb[0].mxu0 %v49_v33 }
 0x17c   :  { %v181_v41 = vpop.f32.mrb[0].mxu0 }
 0x17d   :  { %v207_v42 = vadd.f32 %v200_v39, %v181_v41  ;;  %v183_v43 = vpop.f32.mrb[1].mxu0 }
 0x17e   :  { %v208_v44 = vadd.f32 %v204_v40, %v183_v43 }
 0x17f   :  { %vm209_vm0 = vcmp.ge.f32.partialorder %v207_v42, 0.0  ;;  %v211_v45 = vmul.f32 0.01, %v207_v42 }
 0x180   :  { %vm210_vm1 = vcmp.ge.f32.partialorder %v208_v44, 0.0  ;;  %v212_v46 = vmul.f32 0.01, %v208_v44 }
 0x181   :  { %v213_v47 = vsel %vm209_vm0, %v207_v42, %v211_v45 }
 0x182   :  { %v214_v48 = vsel %vm210_vm1, %v208_v44, %v212_v46  ;;  %215 = vst [vmem:[#allocation8] sm:$0xff] %v213_v47 }
 0x183   :  { %216 = vst [vmem:[#allocation8 + $0x8] sm:$0xff] %v214_v48 }
 0x184   :  { %357 = shalt.err (!%p354_p6)
}
 0x185   :  { %s358_s15 = scalar_lea.hbm %s448_s3, 256 }
 0x186   :  { %p359_p7 = scmp.ne.s32.totalorder %s448_s3, %s358_s15  ;;  %p362_p8 = scmp.lt.u32.totalorder %s358_s15, %s448_s3 }
 0x188   :  { %p364_p9 = pnand %p362_p8, %p359_p7 }
 0x18a   :  { %367 = shalt.err (!%p364_p9)
}
 0x18b   :  { %226 = dma.vmem_to_hbm [thread:$0]  %s224_s12, 256, %s448_s3, [#allocation5]  }
 0x18c   :  { %372 = dma.done.wait [#allocation5], 256  }
 0x18d   :  { %373 = vsyncadd [#allocation5], 4294967040 }
 0x18e   :  { %230 = vsyncpa [#allocation4], 1 }
 0x18f   :  { %231 = vsyncpa [#allocation7], 1 }
 0x190   :  { %232 = vsyncpa [#allocation5], 1 }

</bundles_post_ra>
